<compile_context>
chip_gen: v7x
topology: tpu7x:2x2x1
jax: 0.10.0
libtpu: 0.0.40
codegen_flags: <defaults>
</compile_context>

<pallas_src>
import functools
import math

import jax
import jax.numpy as jnp
from jax.experimental import pallas as pl
from jax.experimental.pallas import tpu as pltpu

LANE = 128  # lane tiling granularity for hidden (interior) feature dims


def _round_up(n: int, m: int) -> int:
    return ((n + m - 1) // m) * m


def _sublane(dtype) -> int:
    # f32 packs 8 rows per vreg sublane group, bf16 packs 16.
    return 16 if jnp.dtype(dtype).itemsize < 4 else 8


# ---------------------------------------------------------------------------
# Fused kernel: h = relu(x @ W1 + b1); ... ; y = sigmoid(h @ Wn + bn)
# ---------------------------------------------------------------------------
def _make_fused_mlp_kernel(n_layers: int):
    def kernel(x_ref, *refs):
        # refs = (w_0, b_0, w_1, b_1, ..., w_{n-1}, b_{n-1}, o_ref)
        o_ref = refs[-1]
        h = x_ref[...]                         # compute dtype (f32 or bf16)
        for i in range(n_layers):
            w = refs[2 * i][...]
            b = refs[2 * i + 1][...]           # (1, out) f32, broadcasts over rows
            acc = jnp.dot(h, w, preferred_element_type=jnp.float32) + b
            if i < n_layers - 1:
                acc = jnp.maximum(acc, 0.0)    # ReLU on the f32 accumulator (VPU)
                h = acc.astype(w.dtype)        # back to compute dtype for next MXU pass
            else:
                h = jax.nn.sigmoid(acc)        # Sigmoid on f32 (EUP)
        o_ref[...] = h.astype(o_ref.dtype)

    return kernel


# ---------------------------------------------------------------------------
# Parameter init (mimics torch.nn.Linear default U(+/- 1/sqrt(fan_in)))
# ---------------------------------------------------------------------------
def init_mlp_params(key, input_n, hidden_layers, output_n, use_bias=True):
    sizes = [input_n] + list(hidden_layers) + [output_n]
    params = []
    for fan_in, fan_out in zip(sizes[:-1], sizes[1:]):
        key, kw, kb = jax.random.split(key, 3)
        bound = 1.0 / math.sqrt(fan_in)
        w = jax.random.uniform(kw, (fan_in, fan_out), jnp.float32, -bound, bound)
        if use_bias:
            b = jax.random.uniform(kb, (1, fan_out), jnp.float32, -bound, bound)
        else:
            b = jnp.zeros((1, fan_out), jnp.float32)
        params.append((w, b))
    return params


def pad_params_to_lanes(params, dtype=jnp.float32):
    """Zero-pad only the INTERIOR (hidden) feature dims to 128 lanes.

    The first layer keeps its true fan_in (matches unpadded x) and the last
    layer keeps its true fan_out (matches the true-width output). Zero-padded
    rows/cols and zero biases keep the valid lanes exact through ReLU.
    Weights are stored in `dtype`; biases stay f32 (added to the f32 acc).
    """
    n = len(params)
    padded = []
    for i, (w, b) in enumerate(params):
        fi, fo = w.shape
        fi_p = fi if i == 0 else _round_up(fi, LANE)
        fo_p = fo if i == n - 1 else _round_up(fo, LANE)
        w_p = jnp.zeros((fi_p, fo_p), dtype).at[:fi, :fo].set(w.astype(dtype))
        b_p = jnp.zeros((1, fo_p), jnp.float32).at[:, :fo].set(b)
        padded.append((w_p, b_p))
    return padded


# ---------------------------------------------------------------------------
# Batch-tile selection: >=2 grid steps for large batches, minimal row padding.
# ---------------------------------------------------------------------------
def _pick_batch_tile(b_rounded: int, max_batch_tile: int) -> int:
    if b_rounded <= 128:
        return b_rounded                      # single small tile, one grid step
    cands = [t for t in (128, 256, 512) if t <= max(max_batch_tile, 128)]

    def score(t):
        padded = _round_up(b_rounded, t)
        steps = padded // t
        # prefer >=2 grid steps (v7x megacore / DMA-compute overlap),
        # then the least row padding, then the largest tile (fewer step overheads).
        return (0 if steps >= 2 else 1, padded - b_rounded, -t)

    return min(cands, key=score)


# ---------------------------------------------------------------------------
# Fused forward: (optional row pad) -> single pallas_call -> (optional row slice)
# ---------------------------------------------------------------------------
@functools.partial(jax.jit, static_argnames=("max_batch_tile",))
def mlp_forward(x, padded_params, max_batch_tile=512):
    n_layers = len(padded_params)
    compute_dtype = padded_params[0][0].dtype
    B, in_n = x.shape
    output_n = padded_params[-1][0].shape[1]

    sub = _sublane(compute_dtype)
    b_rounded = _round_up(B, sub)
    batch_tile = _pick_batch_tile(b_rounded, max_batch_tile)
    b_pad = _round_up(b_rounded, batch_tile)

    x_in = x.astype(compute_dtype)
    if b_pad != B:
        x_in = jnp.pad(x_in, ((0, b_pad - B), (0, 0)))   # row pad only; NO lane pad

    kernel = _make_fused_mlp_kernel(n_layers)

    flat_wb = []
    in_specs = [pl.BlockSpec((batch_tile, in_n), lambda i: (i, 0))]
    for w, b in padded_params:
        flat_wb.extend([w, b])
        # Constant index_map -> weights/biases stay VMEM-resident across grid steps.
        # TODO(synk): if profiling shows these constant blocks get double-buffered,
        # add pipeline_mode=pl.Buffered(1) on them to halve their VMEM footprint.
        in_specs.append(pl.BlockSpec(w.shape, lambda i: (0, 0)))
        in_specs.append(pl.BlockSpec(b.shape, lambda i: (0, 0)))

    itemsize = jnp.dtype(compute_dtype).itemsize
    wb_bytes = sum(int(w.size) * w.dtype.itemsize + int(b.size) * b.dtype.itemsize
                   for w, b in padded_params)
    io_bytes = int(x_in.size) * itemsize + b_pad * output_n * itemsize
    max_width = max(w.shape[1] for w, _ in padded_params)

    # Explicit VMEM budget: resident weights/biases (x2 in case of double
    # buffering) + double-buffered x/out tiles + f32 intermediates + headroom.
    # Clamped to v7x's 64 MiB physical VMEM (plenty at these layer widths).
    vmem_needed = (2 * wb_bytes
                   + 2 * batch_tile * (in_n + output_n) * itemsize
                   + 4 * batch_tile * max_width * 4)
    vmem_limit = int(min(max(vmem_needed + (2 << 20), 16 << 20), 64 << 20))

    cost = pl.CostEstimate(
        flops=2 * b_pad * sum(w.shape[0] * w.shape[1] for w, _ in padded_params),
        transcendentals=b_pad * output_n,           # sigmoid on the last layer
        bytes_accessed=wb_bytes + io_bytes,
    )

    y_pad = pl.pallas_call(
        kernel,
        out_shape=jax.ShapeDtypeStruct((b_pad, output_n), compute_dtype),
        grid=(b_pad // batch_tile,),
        in_specs=in_specs,
        out_specs=pl.BlockSpec((batch_tile, output_n), lambda i: (i, 0)),
        compiler_params=pltpu.CompilerParams(
            dimension_semantics=("parallel",),      # batch axis -> both TCs on v7x
            vmem_limit_bytes=vmem_limit,
        ),
        cost_estimate=cost,
    )(x_in, *flat_wb)

    return y_pad if b_pad == B else y_pad[:B]


# TODO(synk): if this MLP is ever used with feature widths >= ~2048, pad layer
# dims to 256 (v6e/v7x MXU) and switch to a K/N-tiled grid or emit_pipeline over
# layers instead of keeping all weights VMEM-resident (v7x has only 64 MiB).


if __name__ == "__main__":
    # MLP(input_n=16, hidden_layers=[32, 24], output_n=4), batch=8
    input_n, hidden_layers, output_n = 16, [32, 24], 4
    batch = 8

    key = jax.random.PRNGKey(0)
    key, kx = jax.random.split(key)
    x = jax.random.normal(kx, (batch, input_n), jnp.float32)

    params = init_mlp_params(key, input_n, hidden_layers, output_n, use_bias=True)

    # Pure-JAX reference with the unpadded params.
    h_ref = x
    for i, (w, b) in enumerate(params):
        h_ref = h_ref @ w + b
        h_ref = jnp.maximum(h_ref, 0.0) if i < len(params) - 1 else jax.nn.sigmoid(h_ref)

    # f32 path: exact parity with the reference.
    y32 = mlp_forward(x, pad_params_to_lanes(params, jnp.float32))
    jax.block_until_ready(y32)
    assert y32.shape == (batch, output_n)
    assert jnp.allclose(y32, h_ref, atol=1e-5, rtol=1e-5)

    # bf16 path (halved HBM traffic, f32 accumulation): loose tolerance.
    ybf = mlp_forward(x, pad_params_to_lanes(params, jnp.bfloat16))
    jax.block_until_ready(ybf)
    assert ybf.shape == (batch, output_n)
    assert jnp.allclose(ybf.astype(jnp.float32), h_ref, atol=3e-2, rtol=3e-2)

    print("KERNEL_OK")
</pallas_src>

<mosaic_0001>
module attributes {stable_mosaic.version = 11 : i64} {
  func.func @kernel(%arg0: i32, %arg1: memref<8x16xf32, #tpu.memory_space<vmem>>, %arg2: memref<16x128xf32, #tpu.memory_space<vmem>>, %arg3: memref<1x128xf32, #tpu.memory_space<vmem>>, %arg4: memref<128x128xf32, #tpu.memory_space<vmem>>, %arg5: memref<1x128xf32, #tpu.memory_space<vmem>>, %arg6: memref<128x4xf32, #tpu.memory_space<vmem>>, %arg7: memref<1x4xf32, #tpu.memory_space<vmem>>, %arg8: memref<8x4xf32, #tpu.memory_space<vmem>>) attributes {dimension_semantics = [#tpu.dimension_semantics<parallel>], iteration_bounds = array<i64: 1>, scalar_prefetch = 0 : i64, scratch_operands = 0 : i64, tpu.core_type = #tpu.core_type<tc>, window_params = [{transform_indices = @transform_0, window_bounds = array<i64: 8, 16>}, {pipeline_mode = #tpu.pipeline_mode<synchronous>, transform_indices = @transform_1, window_bounds = array<i64: 16, 128>}, {pipeline_mode = #tpu.pipeline_mode<synchronous>, transform_indices = @transform_2, window_bounds = array<i64: 1, 128>}, {pipeline_mode = #tpu.pipeline_mode<synchronous>, transform_indices = @transform_3, window_bounds = array<i64: 128, 128>}, {pipeline_mode = #tpu.pipeline_mode<synchronous>, transform_indices = @transform_4, window_bounds = array<i64: 1, 128>}, {pipeline_mode = #tpu.pipeline_mode<synchronous>, transform_indices = @transform_5, window_bounds = array<i64: 128, 4>}, {pipeline_mode = #tpu.pipeline_mode<synchronous>, transform_indices = @transform_6, window_bounds = array<i64: 1, 4>}, {transform_indices = @transform_7, window_bounds = array<i64: 8, 4>}]} {
    %c0 = arith.constant 0 : index
    %c0_0 = arith.constant 0 : index
    %0 = vector.load %arg1[%c0, %c0_0] : memref<8x16xf32, #tpu.memory_space<vmem>>, vector<8x16xf32>
    %c0_1 = arith.constant 0 : index
    %c0_2 = arith.constant 0 : index
    %1 = vector.load %arg2[%c0_1, %c0_2] : memref<16x128xf32, #tpu.memory_space<vmem>>, vector<16x128xf32>
    %c0_3 = arith.constant 0 : index
    %c0_4 = arith.constant 0 : index
    %2 = vector.load %arg3[%c0_3, %c0_4] : memref<1x128xf32, #tpu.memory_space<vmem>>, vector<1x128xf32>
    %cst = arith.constant dense<0.000000e+00> : vector<8x128xf32>
    %3 = tpu.matmul %0, %1, %cst {dimension_numbers = #tpu.dot_dimension_numbers<[1], [0], [0], [1], [0, 0, 1, 1], [], []>} : vector<8x16xf32>, vector<16x128xf32>, vector<8x128xf32> -> vector<8x128xf32>
    %4 = vector.broadcast %2 : vector<1x128xf32> to vector<8x128xf32>
    %5 = arith.addf %3, %4 : vector<8x128xf32>
    %cst_5 = arith.constant 0.000000e+00 : f32
    %6 = vector.broadcast %cst_5 : f32 to vector<8x128xf32>
    %7 = arith.maximumf %5, %6 : vector<8x128xf32>
    %c0_6 = arith.constant 0 : index
    %c0_7 = arith.constant 0 : index
    %8 = vector.load %arg4[%c0_6, %c0_7] : memref<128x128xf32, #tpu.memory_space<vmem>>, vector<128x128xf32>
    %c0_8 = arith.constant 0 : index
    %c0_9 = arith.constant 0 : index
    %9 = vector.load %arg5[%c0_8, %c0_9] : memref<1x128xf32, #tpu.memory_space<vmem>>, vector<1x128xf32>
    %cst_10 = arith.constant dense<0.000000e+00> : vector<8x128xf32>
    %10 = tpu.matmul %7, %8, %cst_10 {dimension_numbers = #tpu.dot_dimension_numbers<[1], [0], [0], [1], [0, 0, 1, 1], [], []>} : vector<8x128xf32>, vector<128x128xf32>, vector<8x128xf32> -> vector<8x128xf32>
    %11 = vector.broadcast %9 : vector<1x128xf32> to vector<8x128xf32>
    %12 = arith.addf %10, %11 : vector<8x128xf32>
    %cst_11 = arith.constant 0.000000e+00 : f32
    %13 = vector.broadcast %cst_11 : f32 to vector<8x128xf32>
    %14 = arith.maximumf %12, %13 : vector<8x128xf32>
    %c0_12 = arith.constant 0 : index
    %c0_13 = arith.constant 0 : index
    %15 = vector.load %arg6[%c0_12, %c0_13] : memref<128x4xf32, #tpu.memory_space<vmem>>, vector<128x4xf32>
    %c0_14 = arith.constant 0 : index
    %c0_15 = arith.constant 0 : index
    %16 = vector.load %arg7[%c0_14, %c0_15] : memref<1x4xf32, #tpu.memory_space<vmem>>, vector<1x4xf32>
    %cst_16 = arith.constant dense<0.000000e+00> : vector<8x4xf32>
    %17 = tpu.matmul %14, %15, %cst_16 {dimension_numbers = #tpu.dot_dimension_numbers<[1], [0], [0], [1], [0, 0, 1, 1], [], []>} : vector<8x128xf32>, vector<128x4xf32>, vector<8x4xf32> -> vector<8x4xf32>
    %18 = vector.broadcast %16 : vector<1x4xf32> to vector<8x4xf32>
    %19 = arith.addf %17, %18 : vector<8x4xf32>
    %20 = arith.negf %19 : vector<8x4xf32>
    %21 = math.exp %20 : vector<8x4xf32>
    %cst_17 = arith.constant 1.000000e+00 : f32
    %22 = vector.broadcast %cst_17 : f32 to vector<8x4xf32>
    %23 = arith.addf %22, %21 : vector<8x4xf32>
    %24 = arith.divf %22, %23 : vector<8x4xf32>
    %c0_18 = arith.constant 0 : index
    %c0_19 = arith.constant 0 : index
    %25 = vector.load %arg8[%c0_18, %c0_19] : memref<8x4xf32, #tpu.memory_space<vmem>>, vector<8x4xf32>
    tpu.vector_store %arg8[%c0_18, %c0_19], %24 {strides = array<i32>} : memref<8x4xf32, #tpu.memory_space<vmem>>, vector<8x4xf32>,
    return
  }
  func.func @transform_0(%arg0: i32) -> (i32, i32) {
    %c0_i32 = arith.constant 0 : i32
    %c0_i32_0 = arith.constant 0 : i32
    return %arg0, %c0_i32 : i32, i32
  }
  func.func @transform_1(%arg0: i32) -> (i32, i32) {
    %c0_i32 = arith.constant 0 : i32
    %c0_i32_0 = arith.constant 0 : i32
    %c0_i32_1 = arith.constant 0 : i32
    return %c0_i32, %c0_i32_0 : i32, i32
  }
  func.func @transform_2(%arg0: i32) -> (i32, i32) {
    %c0_i32 = arith.constant 0 : i32
    %c0_i32_0 = arith.constant 0 : i32
    %c0_i32_1 = arith.constant 0 : i32
    return %c0_i32, %c0_i32_0 : i32, i32
  }
  func.func @transform_3(%arg0: i32) -> (i32, i32) {
    %c0_i32 = arith.constant 0 : i32
    %c0_i32_0 = arith.constant 0 : i32
    %c0_i32_1 = arith.constant 0 : i32
    return %c0_i32, %c0_i32_0 : i32, i32
  }
  func.func @transform_4(%arg0: i32) -> (i32, i32) {
    %c0_i32 = arith.constant 0 : i32
    %c0_i32_0 = arith.constant 0 : i32
    %c0_i32_1 = arith.constant 0 : i32
    return %c0_i32, %c0_i32_0 : i32, i32
  }
  func.func @transform_5(%arg0: i32) -> (i32, i32) {
    %c0_i32 = arith.constant 0 : i32
    %c0_i32_0 = arith.constant 0 : i32
    %c0_i32_1 = arith.constant 0 : i32
    return %c0_i32, %c0_i32_0 : i32, i32
  }
  func.func @transform_6(%arg0: i32) -> (i32, i32) {
    %c0_i32 = arith.constant 0 : i32
    %c0_i32_0 = arith.constant 0 : i32
    %c0_i32_1 = arith.constant 0 : i32
    return %c0_i32, %c0_i32_0 : i32, i32
  }
  func.func @transform_7(%arg0: i32) -> (i32, i32) {
    %c0_i32 = arith.constant 0 : i32
    %c0_i32_0 = arith.constant 0 : i32
    return %arg0, %c0_i32 : i32, i32
  }
}

</mosaic_0001>

<bundles_post_ra>
// kernel: mlp_forward.1
= control target key start
LH: loop header
LB: loop body
LE: loop exit
PB: predicated region body
PF: predicated region fallthrough
CT: control target
= control target key end

     0   :  { %12 = vsyncpa [#allocation3], 0  ;;  %s529_s24 = smov [#allocation2]   ;;  %s718_s0 = inlined_call_operand.vmem [shape: f32[8,16], index: 0, kind: input, shape index: {}]   ;;  %s719_s1 = inlined_call_operand.hbm [shape: f32[16,128], index: 1, kind: input, shape index: {}]   ;;  %s720_s2 = inlined_call_operand.vmem [shape: f32[1,128], index: 2, kind: input, shape index: {}]   ;;  %s721_s3 = inlined_call_operand.vmem [shape: f32[128,128], index: 3, kind: input, shape index: {}]   ;;  %s722_s4 = inlined_call_operand.vmem [shape: f32[1,128], index: 4, kind: input, shape index: {}]   ;;  %s723_s5 = inlined_call_operand.vmem [shape: f32[128,4], index: 5, kind: input, shape index: {}]   ;;  %s724_s6 = inlined_call_operand.vmem [shape: f32[1,4], index: 6, kind: input, shape index: {}]   ;;  %s725_s7 = inlined_call_operand.vmem [shape: f32[8,4], index: 7, kind: output, shape index: {}]  }
   0x1   :  { %s20_s25 = sshll.u32 %s529_s24, 4  ;;  %s505_s28 = scalar_lea.hbm %s719_s1, 256  ;;  %s21_s25 = int_to_ptr.vmem [resolvable:$true] %s20_s25 }
   0x2   :  { %p506_p0 = scmp.ne.s32.totalorder %s719_s1, %s505_s28  ;;  %p509_p1 = scmp.lt.u32.totalorder %s505_s28, %s719_s1 }
   0x4   :  { %p511_p2 = pnand %p509_p1, %p506_p0 }
   0x6   :  { %514 = shalt.err (!%p511_p2)
}
   0x7   :  { %s515_s10 = scalar_lea.vmem %s21_s25, 256  ;;  %p520_p4 = scmp.lt.s32.totalorder %s21_s25, %s21_s25 }
   0x8   :  { %p516_p3 = scmp.ne.s32.totalorder %s21_s25, %s515_s10  ;;  %p521_p5 = scmp.lt.s32.totalorder %s515_s10, %s515_s10 }
   0xa   :  { %p522_p6 = por %p521_p5, %p520_p4 }
   0xc   :  { %p523_p7 = pnand %p522_p6, %p516_p3 }
   0xe   :  { %526 = shalt.err (!%p523_p7)
}
   0xf   :  { %s530_s11 = smov 128   ;;  %s531_s12 = smov 8  }
  0x10   :  { %26 = dma.hbm_to_vmem [thread:$0]  %s719_s1, 256, %s21_s25, [#allocation3], %s530_s11, %s530_s11, %s531_s12  }
  0x11   :  { %527 = dma.done.wait [#allocation3], 256  }
  0x12   :  { %528 = vsyncadd [#allocation3], 4294967040  ;;  %v532_v0 = vmov 0.0|0.0   ;;  %vm533_vm0 = vmmov 0   ;;  %v534_v1 = vmov 0.0   ;;  %v41_v2 = vld [vmem:[#allocation2] sm:$0xff] }
  0x13   :  { %444 = vmatprep.subr.bf16.mxu0 %v532_v0  ;;  %371 = vmatprep.mubr.msk.f32.mxu0 %vm533_vm0, %v534_v1  ;;  %v42_v3 = vld [vmem:[#allocation2 + $0x8] sm:$0xff]  ;;  %v125_v5 = vld [vmem:[%s721_s3] sm:$0xff]  ;;  %v127_v7 = vld [vmem:[%s721_s3 + $0x10] sm:$0xff]  ;;  %vm50_vm1 = vcmask 130048   ;;  %vm318_vm2 = vcmask 31744  }
  0x14   :  { %447 = vmatprep.subr.bf16.mxu1 %v532_v0  ;;  %406 = vmatprep.mubr.msk.f32.mxu1 %vm533_vm0, %v534_v1  ;;  %v445_v4 = vpack.c.bf16 %v42_v3, %v41_v2  ;;  %v126_v6 = vld [vmem:[%s721_s3 + $0x8] sm:$0xff]  ;;  %v128_v9 = vld [vmem:[%s721_s3 + $0x18] sm:$0xff]  ;;  %v40_v10 = vld [vmem:[%s718_s0] sm:$0xff] }
  0x15   :  { %v448_v8 = vpack.c.bf16 %v126_v6, %v125_v5  ;;  %v451_v11 = vpack.c.bf16 %v128_v9, %v127_v7  ;;  %v129_v12 = vld [vmem:[%s721_s3 + $0x20] sm:$0xff]  ;;  %v130_v13 = vld [vmem:[%s721_s3 + $0x28] sm:$0xff]  ;;  %v131_v15 = vld [vmem:[%s721_s3 + $0x30] sm:$0xff] }
  0x16   :  { %446 = vmatpush3.bf16.msra.mxu0 %v445_v4  ;;  %v454_v14 = vpack.c.bf16 %v130_v13, %v129_v12  ;;  %v132_v16 = vld [vmem:[%s721_s3 + $0x38] sm:$0xff]  ;;  %v133_v18 = vld [vmem:[%s721_s3 + $0x40] sm:$0xff]  ;;  %v134_v19 = vld [vmem:[%s721_s3 + $0x48] sm:$0xff] }
  0x17   :  { %449 = vmatpush3.bf16.msra.mxu1 %v448_v8  ;;  %471 = vmatprep.subr.bf16.mxu0 %v532_v0  ;;  %v457_v17 = vpack.c.bf16 %v132_v16, %v131_v15  ;;  %v460_v20 = vpack.c.bf16 %v134_v19, %v133_v18  ;;  %v135_v21 = vld [vmem:[%s721_s3 + $0x50] sm:$0xff]  ;;  %v136_v22 = vld [vmem:[%s721_s3 + $0x58] sm:$0xff]  ;;  %v137_v24 = vld [vmem:[%s721_s3 + $0x60] sm:$0xff] }
  0x18   :  { %450 = vmatprep.subr.bf16.mxu1 %v532_v0  ;;  %v463_v23 = vpack.c.bf16 %v136_v22, %v135_v21  ;;  %v138_v25 = vld [vmem:[%s721_s3 + $0x68] sm:$0xff]  ;;  %v139_v27 = vld [vmem:[%s721_s3 + $0x70] sm:$0xff]  ;;  %v140_v28 = vld [vmem:[%s721_s3 + $0x78] sm:$0xff] }
  0x19   :  { %372 = vmatmul.mubr.msk.f32.vlgmr.msra.gmra.mrb[0].mxu0 %vm50_vm1, %v40_v10  ;;  %v466_v26 = vpack.c.bf16 %v138_v25, %v137_v24  ;;  %v469_v29 = vpack.c.bf16 %v140_v28, %v139_v27  ;;  %v219_v30 = vld [vmem:[%s723_s5] sm:$0xff]  ;;  %v220_v31 = vld [vmem:[%s723_s5 + $0x8] sm:$0xff]  ;;  %v221_v32 = vld [vmem:[%s723_s5 + $0x10] sm:$0xff] }
  0x1a   :  { %441 = vmatprep.mubr.msk.f32.mxu0 %vm533_vm0, %v534_v1  ;;  %v472_v33 = vpack.c.bf16 %v220_v31, %v219_v30  ;;  %v222_v34 = vld [vmem:[%s723_s5 + $0x18] sm:$0xff]  ;;  %v223_v36 = vld [vmem:[%s723_s5 + $0x20] sm:$0xff]  ;;  %v224_v37 = vld [vmem:[%s723_s5 + $0x28] sm:$0xff] }
  0x1b   :  { %452 = vmatpush3.bf16.msra.mxu1 %v451_v11  ;;  %v475_v35 = vpack.c.bf16 %v222_v34, %v221_v32  ;;  %v478_v38 = vpack.c.bf16 %v224_v37, %v223_v36  ;;  %v225_v39 = vld [vmem:[%s723_s5 + $0x30] sm:$0xff]  ;;  %v226_v40 = vld [vmem:[%s723_s5 + $0x38] sm:$0xff]  ;;  %v227_v42 = vld [vmem:[%s723_s5 + $0x40] sm:$0xff] }
  0x1c   :  { %453 = vmatprep.subr.bf16.mxu1 %v532_v0  ;;  %473 = vmatpush3.bf16.msra.mxu0 %v472_v33  ;;  %v481_v41 = vpack.c.bf16 %v226_v40, %v225_v39  ;;  %v228_v43 = vld [vmem:[%s723_s5 + $0x48] sm:$0xff]  ;;  %v229_v45 = vld [vmem:[%s723_s5 + $0x50] sm:$0xff]  ;;  %v230_v46 = vld [vmem:[%s723_s5 + $0x58] sm:$0xff] }
  0x1d   :  { %474 = vmatprep.subr.bf16.mxu0 %v532_v0  ;;  %v484_v44 = vpack.c.bf16 %v228_v43, %v227_v42  ;;  %v487_v47 = vpack.c.bf16 %v230_v46, %v229_v45  ;;  %v231_v48 = vld [vmem:[%s723_s5 + $0x60] sm:$0xff]  ;;  %v232_v49 = vld [vmem:[%s723_s5 + $0x68] sm:$0xff]  ;;  %v233_v56 = vld [vmem:[%s723_s5 + $0x70] sm:$0xff] }
  0x1e   :  { %v490_v50 = vpack.c.bf16 %v232_v49, %v231_v48  ;;  %v325_v51 = vld [vmem:[%s720_s2] ss:$0 sm:$0xff]  ;;  %v234_v57 = vld [vmem:[%s723_s5 + $0x78] sm:$0xff] }
  0x1f   :  { %455 = vmatpush3.bf16.msra.mxu1 %v454_v14  ;;  %v493_v58 = vpack.c.bf16 %v234_v57, %v233_v56  ;;  %v327_v59 = vld [vmem:[%s722_s4] ss:$0 sm:$0xff] }
  0x20   :  { %456 = vmatprep.subr.bf16.mxu1 %v532_v0  ;;  %476 = vmatpush3.bf16.msra.mxu0 %v475_v35 }
  0x21   :  { %477 = vmatprep.subr.bf16.mxu0 %v532_v0 }
  0x23   :  { %458 = vmatpush3.bf16.msra.mxu1 %v457_v17 }
  0x24   :  { %459 = vmatprep.subr.bf16.mxu1 %v532_v0  ;;  %479 = vmatpush3.bf16.msra.mxu0 %v478_v38 }
  0x25   :  { %480 = vmatprep.subr.bf16.mxu0 %v532_v0 }
  0x27   :  { %461 = vmatpush3.bf16.msra.mxu1 %v460_v20 }
  0x28   :  { %462 = vmatprep.subr.bf16.mxu1 %v532_v0  ;;  %482 = vmatpush3.bf16.msra.mxu0 %v481_v41 }
  0x29   :  { %483 = vmatprep.subr.bf16.mxu0 %v532_v0 }
  0x2b   :  { %464 = vmatpush3.bf16.msra.mxu1 %v463_v23 }
  0x2c   :  { %465 = vmatprep.subr.bf16.mxu1 %v532_v0  ;;  %485 = vmatpush3.bf16.msra.mxu0 %v484_v44 }
  0x2d   :  { %486 = vmatprep.subr.bf16.mxu0 %v532_v0 }
  0x2f   :  { %467 = vmatpush3.bf16.msra.mxu1 %v466_v26 }
  0x30   :  { %468 = vmatprep.subr.bf16.mxu1 %v532_v0  ;;  %488 = vmatpush3.bf16.msra.mxu0 %v487_v47 }
  0x31   :  { %489 = vmatprep.subr.bf16.mxu0 %v532_v0 }
  0x33   :  { %470 = vmatpush3.bf16.msra.mxu1 %v469_v29 }
  0x34   :  { %491 = vmatpush3.bf16.msra.mxu0 %v490_v50 }
  0x35   :  { %492 = vmatprep.subr.bf16.mxu0 %v532_v0  ;;  %v328_v0 = vld [vmem:[%s724_s6] ss:$0 sm:$0xff] }
  0x38   :  { %494 = vmatpush3.bf16.msra.mxu0 %v493_v58 }
  0xec   :  { %v120_v52 = vpop.f32.mrb[0].mxu0 }
  0xed   :  { %v121_v53 = vadd.f32 %v325_v51, %v120_v52  ;;  %v373_v54 = vpop.f32.mrb[1].mxu0 }
  0xef   :  { %v124_v55 = vmax.f32 %v121_v53, 0.0 }
  0xf1   :  { %407 = vmatmul.mubr.f32.vlgmr.msra.gmra.mrb[0].mxu1 %v124_v55 }
 0x1c4   :  { %v214_v60 = vpop.f32.mrb[0].mxu1 }
 0x1c5   :  { %v215_v61 = vadd.f32 %v327_v59, %v214_v60  ;;  %v408_v62 = vpop.f32.mrb[1].mxu1 }
 0x1c7   :  { %v218_v63 = vmax.f32 %v215_v61, 0.0 }
 0x1c9   :  { %442 = vmatmul.mubr.f32.vlgmr.msra.gmra.mrb[2].mxu0 %v218_v63 }
 0x29c   :  { %v308_v1 = vpop.f32.mrb[2].mxu0 }
 0x29d   :  { %v309_v2 = vadd.f32 %v328_v0, %v308_v1  ;;  %v443_v3 = vpop.f32.mrb[3].mxu0 }
 0x29f   :  { %v329_v4 = vmul.f32 -1.442695, %v309_v2 }
 0x2a1   :  { %501 = vpow2.f32 %v329_v4 }
 0x2ab   :  { %v502_v5 = vpop.eup %501 }
 0x2ac   :  { %v315_v6 = vadd.f32 1.0, %v502_v5 }
 0x2ae   :  { %503 = vrcp.f32 %v315_v6 }
 0x2b8   :  { %v504_v7 = vpop.eup %503 }
 0x2b9   :  { %319 = vst.msk [vmem:[%s725_s7] sm:$0xff] %vm318_vm2, %v504_v7 }
 0x2ba   :  { %324 = vsyncpa [#allocation3], 1 }

</bundles_post_ra>
